<compile_context>
chip_gen: v7x
topology: tpu7x:2x2x1
jax: 0.10.0
libtpu: 0.0.40
codegen_flags: <defaults>
</compile_context>

<pallas_src>
import jax
import jax.numpy as jnp
from jax.experimental import pallas as pl
from jax.experimental.pallas import tpu as pltpu

_LANE = 128


def _round_up(x, m):
    return ((x + m - 1) // m) * m


def _pick_spatial(hw, block_cap=2048, chunk_cap=512):
    """Returns (hw_block, hw_pad, chunk): lane-aligned spatial tiling."""
    hw_min = _round_up(hw, _LANE)
    if hw_min <= block_cap:
        hw_block, hw_pad = hw_min, hw_min
    else:
        hw_block = None
        # Prefer an exact multiple-of-128 divisor of HW (no padding needed).
        for b in range(block_cap, _LANE - 1, -_LANE):
            if hw % b == 0:
                hw_block, hw_pad = b, hw
                break
        if hw_block is None:
            hw_block = block_cap
            hw_pad = _round_up(hw, hw_block)
    # Sub-chunk: largest multiple of 128 <= chunk_cap that divides hw_block,
    # so the live (HIDDEN, chunk) intermediate stays vreg-resident-ish.
    chunk = _LANE
    for c in range(min(chunk_cap, hw_block), _LANE - 1, -_LANE):
        if hw_block % c == 0:
            chunk = c
            break
    return hw_block, hw_pad, chunk


def _pick_batch(n, cap=8):
    """Returns (block_n, n_pad). block_n is a multiple of 8 or the full batch."""
    if n <= cap:
        return n, n                      # full batch in one block (rule-safe)
    block_n = 8
    return block_n, _round_up(n, block_n)  # >=2 parallel batch blocks (v7x megacore)


def _make_kernel(block_n, hidden, hw_valid, hw_block, chunk, needs_mask):
    num_chunks = hw_block // chunk

    def kernel(x_ref, w1t_ref, b1_ref, w2_ref, b2_ref, out_ref, acc_ref):
        # x_ref:   (BN, C, HW_BLK)  f32   NCHW consumed directly, spatial on lanes
        # w1t_ref: (HIDDEN, C)      bf16  1x1-conv weight, pre-transposed (MXU LHS)
        # b1_ref:  (HIDDEN, 1)      f32
        # w2_ref:  (HIDDEN, NUM_CLASSES) f32   (1/HW mean scale folded in)
        # b2_ref:  (1, NUM_CLASSES) f32
        # out_ref: (BN, NUM_CLASSES) f32  softmax probabilities
        # acc_ref: (HIDDEN, BN)     f32  running GAP sums across the spatial axis
        s = pl.program_id(1)

        @pl.when(s == 0)
        def _init():
            acc_ref[...] = jnp.zeros_like(acc_ref)

        w1t = w1t_ref[...]                      # (HIDDEN, C) bf16
        b1 = b1_ref[...]                        # (HIDDEN, 1) f32

        # Per-sample MXU channel mix over lane-aligned sub-chunks.  The chunk
        # loop carries `col`, so intermediates are a sequential chain with a
        # bounded (HIDDEN, chunk) live range (no multi-MiB VMEM streaming).
        for b in range(block_n):
            col = jnp.zeros((hidden, 1), jnp.float32)
            for q in range(num_chunks):
                lo = q * chunk                                   # static, 128-aligned
                xb = x_ref[b, :, lo:lo + chunk].astype(jnp.bfloat16)   # (C, chunk)
                h = jnp.dot(w1t, xb, preferred_element_type=jnp.float32)  # (HIDDEN, chunk) MXU
                h = jnp.maximum(h + b1, 0.0)                     # bias + ReLU (VPU)
                if needs_mask:
                    pos = s * hw_block + lo + jax.lax.broadcasted_iota(
                        jnp.int32, (hidden, chunk), 1)
                    h = jnp.where(pos < hw_valid, h, 0.0)        # drop padded pixels
                col = col + jnp.sum(h, axis=-1, keepdims=True)   # lane reduce (XLU)
            acc_ref[:, b:b + 1] += col

        @pl.when(s == pl.num_programs(1) - 1)
        def _finalize():
            feat_t = acc_ref[...]                                # (HIDDEN, BN); mean folded into w2
            logits = jnp.einsum('hb,hc->bc', feat_t, w2_ref[...],
                                preferred_element_type=jnp.float32)  # (BN, NUM_CLASSES)
            logits = logits + b2_ref[...]
            m = jnp.max(logits, axis=-1, keepdims=True)
            e = jnp.exp(logits - m)
            # Exact division (runs once per batch block on a tiny tile): output
            # probabilities sum to 1, matching torch.softmax semantics.
            out_ref[...] = (e / jnp.sum(e, axis=-1, keepdims=True)).astype(out_ref.dtype)

    return kernel


def classification_infer(imgs_nchw, w1, b1, w2, b2, *, hw_block_cap=2048, chunk_cap=512):
    """imgs_nchw: (N, C, H, W) f32 -> softmax probabilities (N, num_classes)."""
    N, C, H, W = imgs_nchw.shape
    HW = H * W
    hidden = w1.shape[1]
    num_classes = w2.shape[1]

    block_n, n_pad = _pick_batch(N)
    hw_block, hw_pad, chunk = _pick_spatial(HW, hw_block_cap, chunk_cap)

    # Free contiguous reshape — no NCHW->NHWC transpose / HBM round trip.
    x = imgs_nchw.reshape(N, C, HW).astype(jnp.float32)
    if (hw_pad != HW) or (n_pad != N):
        x = jnp.pad(x, ((0, n_pad - N), (0, 0), (0, hw_pad - HW)))

    w1t = jnp.asarray(w1).T.astype(jnp.bfloat16)                 # (hidden, C) MXU LHS
    b1c = jnp.asarray(b1).reshape(hidden, 1).astype(jnp.float32)
    w2s = (jnp.asarray(w2) * (1.0 / float(HW))).astype(jnp.float32)  # fold GAP mean
    b2r = jnp.asarray(b2).reshape(1, num_classes).astype(jnp.float32)

    grid = (n_pad // block_n, hw_pad // hw_block)
    kernel = _make_kernel(block_n, hidden, HW, hw_block, chunk,
                          needs_mask=(hw_pad != HW))

    out = pl.pallas_call(
        kernel,
        out_shape=jax.ShapeDtypeStruct((n_pad, num_classes), jnp.float32),
        grid_spec=pltpu.PrefetchScalarGridSpec(
            num_scalar_prefetch=0,
            grid=grid,
            in_specs=[
                pl.BlockSpec((block_n, C, hw_block), lambda n, s: (n, 0, s)),
                pl.BlockSpec((hidden, C), lambda n, s: (0, 0)),
                pl.BlockSpec((hidden, 1), lambda n, s: (0, 0)),
                pl.BlockSpec((hidden, num_classes), lambda n, s: (0, 0)),
                pl.BlockSpec((1, num_classes), lambda n, s: (0, 0)),
            ],
            out_specs=pl.BlockSpec((block_n, num_classes), lambda n, s: (n, 0)),
            scratch_shapes=[pltpu.VMEM((hidden, block_n), jnp.float32)],
        ),
        compiler_params=pltpu.CompilerParams(
            # batch axis parallel (megacore), spatial reduction axis last + arbitrary
            dimension_semantics=("parallel", "arbitrary"),
        ),
    )(x, w1t, b1c, w2s, b2r)

    return out[:N] if n_pad != N else out


if __name__ == "__main__":
    # Small shapes consistent with the module: batch=2, RGB channels=3,
    # spatial=16x16, hidden=32, num_classes=4 (len(dictionary)==4).
    N, C, H, W = 2, 3, 16, 16
    HIDDEN, NUM_CLASSES = 32, 4

    key = jax.random.PRNGKey(0)
    k_img, k_w1, k_b1, k_w2, k_b2 = jax.random.split(key, 5)

    imgs = jax.random.normal(k_img, (N, C, H, W), dtype=jnp.float32)
    w1 = jax.random.normal(k_w1, (C, HIDDEN), dtype=jnp.float32) * 0.1
    b1 = jax.random.normal(k_b1, (HIDDEN,), dtype=jnp.float32) * 0.01
    w2 = jax.random.normal(k_w2, (HIDDEN, NUM_CLASSES), dtype=jnp.float32) * 0.1
    b2 = jax.random.normal(k_b2, (NUM_CLASSES,), dtype=jnp.float32) * 0.01

    out = jax.block_until_ready(classification_infer(imgs, w1, b1, w2, b2))
    # forward(mode='infer') also computes (and discards) argmax preds — glue:
    preds = jax.block_until_ready(jnp.argmax(out, axis=1))

    # Pure-JAX reference of the same synthetic backbone + softmax (matching the
    # kernel's bf16 channel-mix with f32 accumulation).
    x_ref = imgs.reshape(N, C, H * W)
    w1t_bf = w1.T.astype(jnp.bfloat16)
    h_ref = jnp.einsum("jc,ncp->njp", w1t_bf, x_ref.astype(jnp.bfloat16),
                       preferred_element_type=jnp.float32)
    h_ref = jnp.maximum(h_ref + b1[None, :, None], 0.0)
    feat_ref = jnp.mean(h_ref, axis=-1)
    logits_ref = feat_ref @ w2 + b2
    ref = jax.nn.softmax(logits_ref, axis=-1)

    assert out.shape == (N, NUM_CLASSES)
    assert bool(jnp.all(jnp.abs(jnp.sum(out, axis=1) - 1.0) < 1e-3))
    assert bool(jnp.allclose(out, ref, atol=5e-3, rtol=5e-3))

    print("KERNEL_OK")
    # TODO(synk): train/val modes (CrossEntropyLoss2d with per-class weights)
    # are not implemented; only the 'infer' path is reproduced.
</pallas_src>

<mosaic_0001>
module attributes {stable_mosaic.version = 11 : i64} {
  func.func @kernel(%arg0: i32, %arg1: i32, %arg2: memref<2x3x256xf32, #tpu.memory_space<vmem>>, %arg3: memref<32x3xbf16, #tpu.memory_space<vmem>>, %arg4: memref<32x1xf32, #tpu.memory_space<vmem>>, %arg5: memref<32x4xf32, #tpu.memory_space<vmem>>, %arg6: memref<1x4xf32, #tpu.memory_space<vmem>>, %arg7: memref<2x4xf32, #tpu.memory_space<vmem>>, %arg8: memref<32x2xf32, #tpu.memory_space<vmem>>) attributes {dimension_semantics = [#tpu.dimension_semantics<parallel>, #tpu.dimension_semantics<arbitrary>], iteration_bounds = array<i64: 1, 1>, scalar_prefetch = 0 : i64, scratch_operands = 1 : i64, tpu.core_type = #tpu.core_type<tc>, window_params = [{transform_indices = @transform_0, window_bounds = array<i64: 2, 3, 256>}, {pipeline_mode = #tpu.pipeline_mode<synchronous>, transform_indices = @transform_1, window_bounds = array<i64: 32, 3>}, {pipeline_mode = #tpu.pipeline_mode<synchronous>, transform_indices = @transform_2, window_bounds = array<i64: 32, 1>}, {pipeline_mode = #tpu.pipeline_mode<synchronous>, transform_indices = @transform_3, window_bounds = array<i64: 32, 4>}, {pipeline_mode = #tpu.pipeline_mode<synchronous>, transform_indices = @transform_4, window_bounds = array<i64: 1, 4>}, {transform_indices = @transform_5, window_bounds = array<i64: 2, 4>}]} {
    %c0_i32 = arith.constant 0 : i32
    %0 = arith.cmpi eq, %arg1, %c0_i32 : i32
    %1 = arith.extui %0 : i1 to i32
    %c0_i32_0 = arith.constant 0 : i32
    %2 = arith.cmpi ne, %1, %c0_i32_0 : i32
    scf.if %2 {
      %cst_26 = arith.constant 0.000000e+00 : f32
      %38 = vector.broadcast %cst_26 : f32 to vector<32x2xf32>
      %c0_27 = arith.constant 0 : index
      %c0_28 = arith.constant 0 : index
      %39 = vector.load %arg8[%c0_27, %c0_28] : memref<32x2xf32, #tpu.memory_space<vmem>>, vector<32x2xf32>
      tpu.vector_store %arg8[%c0_27, %c0_28], %38 {strides = array<i32>} : memref<32x2xf32, #tpu.memory_space<vmem>>, vector<32x2xf32>,
    } else {
    }
    %c0 = arith.constant 0 : index
    %c0_1 = arith.constant 0 : index
    %3 = vector.load %arg3[%c0, %c0_1] : memref<32x3xbf16, #tpu.memory_space<vmem>>, vector<32x3xbf16>
    %c0_2 = arith.constant 0 : index
    %c0_3 = arith.constant 0 : index
    %4 = vector.load %arg4[%c0_2, %c0_3] : memref<32x1xf32, #tpu.memory_space<vmem>>, vector<32x1xf32>
    %cst = arith.constant 0.000000e+00 : f32
    %5 = vector.broadcast %cst : f32 to vector<32x1xf32>
    %c0_4 = arith.constant 0 : index
    %c0_5 = arith.constant 0 : index
    %c0_6 = arith.constant 0 : index
    %6 = vector.load %arg2[%c0_4, %c0_5, %c0_6] : memref<2x3x256xf32, #tpu.memory_space<vmem>>, vector<1x3x256xf32>
    %7 = vector.shape_cast %6 : vector<1x3x256xf32> to vector<3x256xf32>
    %8 = arith.truncf %7 : vector<3x256xf32> to vector<3x256xbf16>
    %cst_7 = arith.constant dense<0.000000e+00> : vector<32x256xf32>
    %9 = tpu.matmul %3, %8, %cst_7 {dimension_numbers = #tpu.dot_dimension_numbers<[1], [0], [0], [1], [0, 0, 1, 1], [], []>} : vector<32x3xbf16>, vector<3x256xbf16>, vector<32x256xf32> -> vector<32x256xf32>
    %10 = vector.broadcast %4 : vector<32x1xf32> to vector<32x256xf32>
    %11 = arith.addf %9, %10 : vector<32x256xf32>
    %cst_8 = arith.constant 0.000000e+00 : f32
    %12 = vector.broadcast %cst_8 : f32 to vector<32x256xf32>
    %13 = arith.maximumf %11, %12 : vector<32x256xf32>
    %cst_9 = arith.constant dense<0.000000e+00> : vector<32xf32>
    %14 = vector.multi_reduction <add>, %13, %cst_9 [1] : vector<32x256xf32> to vector<32xf32>
    %15 = vector.shape_cast %14 : vector<32xf32> to vector<32x1xf32>
    %16 = arith.addf %5, %15 : vector<32x1xf32>
    %c0_10 = arith.constant 0 : index
    %c0_11 = arith.constant 0 : index
    %17 = vector.load %arg8[%c0_10, %c0_11] : memref<32x2xf32, #tpu.memory_space<vmem>>, vector<32x1xf32>
    %18 = arith.addf %17, %16 : vector<32x1xf32>
    %c0_12 = arith.constant 0 : index
    %c0_13 = arith.constant 0 : index
    %19 = vector.load %arg8[%c0_12, %c0_13] : memref<32x2xf32, #tpu.memory_space<vmem>>, vector<32x1xf32>
    tpu.vector_store %arg8[%c0_12, %c0_13], %18 {strides = array<i32>} : memref<32x2xf32, #tpu.memory_space<vmem>>, vector<32x1xf32>,
    %cst_14 = arith.constant 0.000000e+00 : f32
    %20 = vector.broadcast %cst_14 : f32 to vector<32x1xf32>
    %c1 = arith.constant 1 : index
    %c0_15 = arith.constant 0 : index
    %c0_16 = arith.constant 0 : index
    %21 = vector.load %arg2[%c1, %c0_15, %c0_16] : memref<2x3x256xf32, #tpu.memory_space<vmem>>, vector<1x3x256xf32>
    %22 = vector.shape_cast %21 : vector<1x3x256xf32> to vector<3x256xf32>
    %23 = arith.truncf %22 : vector<3x256xf32> to vector<3x256xbf16>
    %cst_17 = arith.constant dense<0.000000e+00> : vector<32x256xf32>
    %24 = tpu.matmul %3, %23, %cst_17 {dimension_numbers = #tpu.dot_dimension_numbers<[1], [0], [0], [1], [0, 0, 1, 1], [], []>} : vector<32x3xbf16>, vector<3x256xbf16>, vector<32x256xf32> -> vector<32x256xf32>
    %25 = vector.broadcast %4 : vector<32x1xf32> to vector<32x256xf32>
    %26 = arith.addf %24, %25 : vector<32x256xf32>
    %cst_18 = arith.constant 0.000000e+00 : f32
    %27 = vector.broadcast %cst_18 : f32 to vector<32x256xf32>
    %28 = arith.maximumf %26, %27 : vector<32x256xf32>
    %cst_19 = arith.constant dense<0.000000e+00> : vector<32xf32>
    %29 = vector.multi_reduction <add>, %28, %cst_19 [1] : vector<32x256xf32> to vector<32xf32>
    %30 = vector.shape_cast %29 : vector<32xf32> to vector<32x1xf32>
    %31 = arith.addf %20, %30 : vector<32x1xf32>
    %c0_20 = arith.constant 0 : index
    %c1_21 = arith.constant 1 : index
    %32 = vector.load %arg8[%c0_20, %c1_21] : memref<32x2xf32, #tpu.memory_space<vmem>>, vector<32x1xf32>
    %33 = arith.addf %32, %31 : vector<32x1xf32>
    %c0_22 = arith.constant 0 : index
    %c1_23 = arith.constant 1 : index
    %34 = vector.load %arg8[%c0_22, %c1_23] : memref<32x2xf32, #tpu.memory_space<vmem>>, vector<32x1xf32>
    tpu.vector_store %arg8[%c0_22, %c1_23], %33 {strides = array<i32>} : memref<32x2xf32, #tpu.memory_space<vmem>>, vector<32x1xf32>,
    %c0_i32_24 = arith.constant 0 : i32
    %35 = arith.cmpi eq, %arg1, %c0_i32_24 : i32
    %36 = arith.extui %35 : i1 to i32
    %c0_i32_25 = arith.constant 0 : i32
    %37 = arith.cmpi ne, %36, %c0_i32_25 : i32
    scf.if %37 {
      %c0_26 = arith.constant 0 : index
      %c0_27 = arith.constant 0 : index
      %38 = vector.load %arg8[%c0_26, %c0_27] : memref<32x2xf32, #tpu.memory_space<vmem>>, vector<32x2xf32>
      %c0_28 = arith.constant 0 : index
      %c0_29 = arith.constant 0 : index
      %39 = vector.load %arg5[%c0_28, %c0_29] : memref<32x4xf32, #tpu.memory_space<vmem>>, vector<32x4xf32>
      "tpu.trace_start"() <{level = 10 : i32, message = "hb,hc->bc"}> : () -> ()
      %cst_30 = arith.constant dense<0.000000e+00> : vector<2x4xf32>
      %40 = tpu.matmul %38, %39, %cst_30 {dimension_numbers = #tpu.dot_dimension_numbers<[0], [0], [1], [1], [0, 1, 1, 1], [], []>} : vector<32x2xf32>, vector<32x4xf32>, vector<2x4xf32> -> vector<2x4xf32>
      "tpu.trace_stop"() : () -> ()
      %c0_31 = arith.constant 0 : index
      %c0_32 = arith.constant 0 : index
      %41 = vector.load %arg6[%c0_31, %c0_32] : memref<1x4xf32, #tpu.memory_space<vmem>>, vector<1x4xf32>
      %42 = vector.broadcast %41 : vector<1x4xf32> to vector<2x4xf32>
      %43 = arith.addf %40, %42 : vector<2x4xf32>
      %cst_33 = arith.constant dense<0xFF800000> : vector<2xf32>
      %44 = vector.multi_reduction <maximumf>, %43, %cst_33 [1] : vector<2x4xf32> to vector<2xf32>
      %45 = vector.shape_cast %44 : vector<2xf32> to vector<2x1xf32>
      %46 = vector.broadcast %45 : vector<2x1xf32> to vector<2x4xf32>
      %47 = arith.subf %43, %46 : vector<2x4xf32>
      %48 = math.exp %47 : vector<2x4xf32>
      %cst_34 = arith.constant dense<0.000000e+00> : vector<2xf32>
      %49 = vector.multi_reduction <add>, %48, %cst_34 [1] : vector<2x4xf32> to vector<2xf32>
      %50 = vector.shape_cast %49 : vector<2xf32> to vector<2x1xf32>
      %51 = vector.broadcast %50 : vector<2x1xf32> to vector<2x4xf32>
      %52 = arith.divf %48, %51 : vector<2x4xf32>
      %c0_35 = arith.constant 0 : index
      %c0_36 = arith.constant 0 : index
      %53 = vector.load %arg7[%c0_35, %c0_36] : memref<2x4xf32, #tpu.memory_space<vmem>>, vector<2x4xf32>
      tpu.vector_store %arg7[%c0_35, %c0_36], %52 {strides = array<i32>} : memref<2x4xf32, #tpu.memory_space<vmem>>, vector<2x4xf32>,
    } else {
    }
    return
  }
  func.func @transform_0(%arg0: i32, %arg1: i32) -> (i32, i32, i32) {
    %c0_i32 = arith.constant 0 : i32
    %c0_i32_0 = arith.constant 0 : i32
    return %arg0, %c0_i32, %arg1 : i32, i32, i32
  }
  func.func @transform_1(%arg0: i32, %arg1: i32) -> (i32, i32) {
    %c0_i32 = arith.constant 0 : i32
    %c0_i32_0 = arith.constant 0 : i32
    %c0_i32_1 = arith.constant 0 : i32
    return %c0_i32, %c0_i32_0 : i32, i32
  }
  func.func @transform_2(%arg0: i32, %arg1: i32) -> (i32, i32) {
    %c0_i32 = arith.constant 0 : i32
    %c0_i32_0 = arith.constant 0 : i32
    %c0_i32_1 = arith.constant 0 : i32
    return %c0_i32, %c0_i32_0 : i32, i32
  }
  func.func @transform_3(%arg0: i32, %arg1: i32) -> (i32, i32) {
    %c0_i32 = arith.constant 0 : i32
    %c0_i32_0 = arith.constant 0 : i32
    %c0_i32_1 = arith.constant 0 : i32
    return %c0_i32, %c0_i32_0 : i32, i32
  }
  func.func @transform_4(%arg0: i32, %arg1: i32) -> (i32, i32) {
    %c0_i32 = arith.constant 0 : i32
    %c0_i32_0 = arith.constant 0 : i32
    %c0_i32_1 = arith.constant 0 : i32
    return %c0_i32, %c0_i32_0 : i32, i32
  }
  func.func @transform_5(%arg0: i32, %arg1: i32) -> (i32, i32) {
    %c0_i32 = arith.constant 0 : i32
    %c0_i32_0 = arith.constant 0 : i32
    return %arg0, %c0_i32 : i32, i32
  }
}

</mosaic_0001>

<bundles_post_ra>
// kernel: tpu_custom_call.1
= control target key start
LH: loop header
LB: loop body
LE: loop exit
PB: predicated region body
PF: predicated region fallthrough
CT: control target
= control target key end

     0   :  { %vm82_vm0 = vcmask 1040384   ;;  %vm83_vm1 = vcmask 1041408   ;;  %v507_v2 = vmov 65535   ;;  %v508_v6 = vmov 0   ;;  %s605_s0 = inlined_call_operand.vmem [shape: f32[2,3,256], index: 0, kind: input, shape index: {}]   ;;  %s606_s1 = inlined_call_operand.vmem [shape: bf16[32,3], index: 1, kind: input, shape index: {}]   ;;  %s607_s2 = inlined_call_operand.vmem [shape: f32[32,1], index: 2, kind: input, shape index: {}]   ;;  %s608_s3 = inlined_call_operand.vmem [shape: f32[32,4], index: 3, kind: input, shape index: {}]   ;;  %s609_s4 = inlined_call_operand.vmem [shape: f32[1,4], index: 4, kind: input, shape index: {}]   ;;  %s610_s5 = inlined_call_operand.hbm [shape: f32[2,4], index: 5, kind: output, shape index: {}]  }
   0x1   :  { %v39_v0 = vld [vmem:[%s605_s0] sm:$0x77]  ;;  %v84_v3 = vsel %vm82_vm0, 4294967295, %v507_v2  ;;  %v440_v4 = vld [vmem:[%s605_s0 + $0x8] sm:$0x77]  ;;  %124 = vmatprep.mubr.bf16.mxu0 %v508_v6  ;;  %227 = vmatprep.mubr.bf16.mxu1 %v508_v6  ;;  %v37_v14 = vld [vmem:[%s607_s2 + $0x10] sm:$0xff] }
   0x2   :  { %v41_v1 = vcombine.high %v39_v0, %v39_v0  ;;  %v43_v5 = vpack.c.bf16 %v39_v0, %v39_v0  ;;  %v85_v7 = vsel %vm83_vm1, %v84_v3, 0  ;;  %v185_v8 = vcombine.high %v440_v4, %v440_v4  ;;  %473 = vset.pattern.permute.xlu0 %v508_v6  ;;  %474 = vset.pattern.permute.xlu1 %v508_v6  ;;  %v35_v11 = vld [vmem:[%s607_s2] sm:$0xff] }
   0x3   :  { %v187_v9 = vpack.c.bf16 %v440_v4, %v440_v4  ;;  %47 = vperm.xlu0 %473, %v35_v11   ;;  %57 = vperm.xlu1 %474, %v37_v14  }
   0x4   :  { %v44_v10 = vpack.c.bf16 %v41_v1, %v41_v1  ;;  %v188_v12 = vpack.c.bf16 %v185_v8, %v185_v8  ;;  %v87_v13 = vand.u32 %v85_v7, %v43_v5 }
   0x5   :  { %v190_v16 = vand.u32 %v187_v9, %v85_v7 }
   0x6   :  { %v90_v15 = vand.u32 %v85_v7, %v44_v10 }
   0x7   :  { %10 = vsyncpa [#allocation4], 0  ;;  %v193_v17 = vand.u32 %v188_v12, %v85_v7  ;;  %v36_v18 = vld [vmem:[%s607_s2 + $0x8] sm:$0xff]  ;;  %v477_v19 = vld [vmem:[%s606_s1] sm:$0xff]   ;;  %vm75_vm2 = vcmask 23552   ;;  %vm26_vm3 = vcmask 15360  }
   0x8   :  { %92 = vmatprep.subr.bf16.mxu0 %v90_v15  ;;  %v38_v20 = vld [vmem:[%s607_s2 + $0x18] sm:$0xff]  ;;  %52 = vperm.xlu0 %473, %v36_v18   ;;  %v478_v21 = vld [vmem:[%s606_s1 + $0x8] sm:$0xff]   ;;  %vm511_vm4 = vmmov 0   ;;  %vm177_vm5 = vcmask 7168   ;;  %vm280_vm6 = vcmask 15368   ;;  %vm335_vm7 = vcmask 261120  }
   0x9   :  { %195 = vmatprep.subr.bf16.mxu1 %v193_v17  ;;  %93 = vmatpush1.bf16.msra.mxu0 %v87_v13  ;;  %v509_v17 = vmov 0.0   ;;  %vm409_vm8 = vcmask 25600   ;;  %s512_s15 = smov [#allocation3]  }
   0xa   :  { %196 = vmatpush1.bf16.msra.mxu1 %v190_v16  ;;  %62 = vperm.xlu1 %474, %v38_v20   ;;  %27 = vst.msk [vmem:[#allocation2] sm:$0xff] %vm26_vm3, %v509_v17  ;;  %28 = vst.msk [vmem:[#allocation2 + $0x8] sm:$0xff] %vm26_vm3, %v509_v17  ;;  %v293_v20 = vld [vmem:[%s608_s3 + $0x8] sm:$0xff]  ;;  %s428_s16 = sshll.u32 %s512_s15, 4  ;;  %s429_s16 = int_to_ptr.vmem [resolvable:$true] %s428_s16 }
   0xb   :  { %29 = vst.msk [vmem:[#allocation2 + $0x10] sm:$0xff] %vm26_vm3, %v509_v17  ;;  %30 = vst.msk [vmem:[#allocation2 + $0x18] sm:$0xff] %vm26_vm3, %v509_v17  ;;  %p488_p1 = scmp.lt.s32.totalorder %s429_s16, %s429_s16 }
   0xc   :  { %438 = vmatmul.mubr.msk.bf16.vlgmr.msra.gmra.mrb[0].mxu0 %vm75_vm2, %v477_v19 }
   0xd   :  { %441 = vmatmul.mubr.msk.bf16.vlgmr.msra.gmra.mrb[0].mxu1 %vm75_vm2, %v477_v19  ;;  %134 = vmatprep.mubr.bf16.mxu0 %v508_v6  ;;  %v292_v19 = vld [vmem:[%s608_s3] sm:$0xff] }
   0xe   :  { %237 = vmatprep.mubr.bf16.mxu1 %v508_v6 }
  0x14   :  { %439 = vmatmul.mubr.msk.bf16.gmra.mrb[4].mxu0 %vm75_vm2, %v478_v21 }
  0x15   :  { %442 = vmatmul.mubr.msk.bf16.gmra.mrb[4].mxu1 %vm75_vm2, %v478_v21  ;;  %v294_v21 = vld [vmem:[%s608_s3 + $0x10] sm:$0xff]  ;;  %458 = vmatprep.mubr.msk.f32.mxu0 %vm511_vm4, %v509_v17 }
  0x82   :  { %v48_v22 = vpop.permute.xlu0 %47  ;;  %v58_v23 = vpop.permute.xlu1 %57 }
  0x87   :  { %v53_v25 = vpop.permute.xlu0 %52 }
  0x89   :  { %v63_v52 = vpop.permute.xlu1 %62 }
  0xdf   :  { %v126_v24 = vpop.f32.mrb[0].mxu0 }
  0xe0   :  { %v127_v26 = vadd.f32 %v126_v24, %v48_v22  ;;  %v229_v27 = vpop.f32.mrb[0].mxu1  ;;  %v128_v28 = vpop.f32.mrb[1].mxu0  ;;  %v295_v24 = vld [vmem:[%s608_s3 + $0x18] sm:$0xff] }
  0xe1   :  { %v230_v29 = vadd.f32 %v229_v27, %v48_v22  ;;  %v129_v30 = vadd.f32 %v128_v28, %v48_v22  ;;  %v231_v31 = vpop.f32.mrb[1].mxu1  ;;  %v130_v32 = vpop.f32.mrb[2].mxu0  ;;  %v170_v28 = vld [vmem:[#allocation2 + $0x8] sm:$0xff] }
  0xe2   :  { %v145_v33 = vmax.f32 %v127_v26, 0.0  ;;  %v232_v34 = vadd.f32 %v231_v31, %v48_v22  ;;  %v131_v35 = vadd.f32 %v130_v32, %v53_v25  ;;  %v233_v36 = vpop.f32.mrb[2].mxu1  ;;  %v132_v37 = vpop.f32.mrb[3].mxu0  ;;  %v510_v22 = vmov 0.0|0.0   ;;  %v169_v26 = vld [vmem:[#allocation2] sm:$0xff]  ;;  %v171_v32 = vld [vmem:[#allocation2 + $0x10] sm:$0xff] }
  0xe3   :  { %v248_v38 = vmax.f32 %v230_v29, 0.0  ;;  %v146_v39 = vmax.f32 %v129_v30, 0.0  ;;  %v234_v40 = vadd.f32 %v233_v36, %v53_v25  ;;  %v133_v41 = vadd.f32 %v132_v37, %v53_v25  ;;  %v235_v42 = vpop.f32.mrb[3].mxu1  ;;  %461 = vmatprep.subr.bf16.mxu0 %v510_v22  ;;  %v172_v37 = vld [vmem:[#allocation2 + $0x18] sm:$0xff] }
  0xe4   :  { %v249_v43 = vmax.f32 %v232_v34, 0.0  ;;  %v147_v44 = vmax.f32 %v131_v35, 0.0  ;;  %v236_v45 = vadd.f32 %v235_v42, %v53_v25  ;;  %v465_v25 = vpack.c.bf16 %v295_v24, %v294_v21 }
  0xe5   :  { %v250_v46 = vmax.f32 %v234_v40, 0.0  ;;  %v148_v47 = vmax.f32 %v133_v41, 0.0  ;;  %v153_v48 = vadd.f32 %v146_v39, %v145_v33 }
  0xe6   :  { %v251_v49 = vmax.f32 %v236_v45, 0.0  ;;  %v256_v50 = vadd.f32 %v249_v43, %v248_v38 }
  0xe7   :  { %v136_v51 = vpop.f32.mrb[4].mxu0  ;;  %154 = vadd.xlane.f32.xlu0 %v153_v48  ;;  %v156_v53 = vadd.f32 %v148_v47, %v147_v44 }
  0xe8   :  { %v137_v54 = vadd.f32 %v136_v51, %v58_v23  ;;  %v239_v55 = vpop.f32.mrb[4].mxu1  ;;  %v138_v56 = vpop.f32.mrb[5].mxu0  ;;  %v259_v57 = vadd.f32 %v251_v49, %v250_v46 }
  0xe9   :  { %v240_v58 = vadd.f32 %v239_v55, %v58_v23  ;;  %v139_v59 = vadd.f32 %v138_v56, %v58_v23  ;;  %v241_v60 = vpop.f32.mrb[5].mxu1  ;;  %v140_v61 = vpop.f32.mrb[6].mxu0  ;;  %157 = vadd.xlane.f32.xlu1 %v156_v53  ;;  %v443_v55 = vld [vmem:[%s609_s4] ss:$0 sm:$0xff]  ;;  %s483_s4 = scalar_lea.vmem %s429_s16, 32 }
  0xea   :  { %v149_v62 = vmax.f32 %v137_v54, 0.0  ;;  %v242_v63 = vadd.f32 %v241_v60, %v58_v23  ;;  %v141_v0 = vadd.f32 %v140_v61, %v63_v52  ;;  %v243_v1 = vpop.f32.mrb[6].mxu1  ;;  %v142_v2 = vpop.f32.mrb[7].mxu0  ;;  %v462_v23 = vpack.c.bf16 %v293_v20, %v292_v19  ;;  %p484_p0 = scmp.ne.s32.totalorder %s429_s16, %s483_s4  ;;  %p489_p2 = scmp.lt.s32.totalorder %s483_s4, %s483_s4 }
  0xeb   :  { %v252_v3 = vmax.f32 %v240_v58, 0.0  ;;  %v150_v4 = vmax.f32 %v139_v59, 0.0  ;;  %v244_v5 = vadd.f32 %v243_v1, %v63_v52  ;;  %v143_v6 = vadd.f32 %v142_v2, %v63_v52  ;;  %v245_v7 = vpop.f32.mrb[7].mxu1 }
  0xec   :  { %v253_v8 = vmax.f32 %v242_v63, 0.0  ;;  %v151_v9 = vmax.f32 %v141_v0, 0.0  ;;  %v246_v10 = vadd.f32 %v245_v7, %v63_v52  ;;  %463 = vmatpush3.bf16.msra.mxu0 %v462_v23  ;;  %p490_p3 = por %p489_p2, %p488_p1 }
  0xed   :  { %v254_v11 = vmax.f32 %v244_v5, 0.0  ;;  %v152_v12 = vmax.f32 %v143_v6, 0.0  ;;  %257 = vadd.xlane.f32.xlu1 %v256_v50  ;;  %v159_v13 = vadd.f32 %v150_v4, %v149_v62  ;;  %464 = vmatprep.subr.bf16.mxu0 %v510_v22 }
  0xee   :  { %v255_v14 = vmax.f32 %v246_v10, 0.0  ;;  %v262_v15 = vadd.f32 %v253_v8, %v252_v3  ;;  %p491_p4 = pnand %p490_p3, %p484_p0 }
  0xef   :  { %160 = vadd.xlane.f32.xlu0 %v159_v13  ;;  %v162_v16 = vadd.f32 %v152_v12, %v151_v9 }
  0xf0   :  { %v265_v18 = vadd.f32 %v255_v14, %v254_v11  ;;  %466 = vmatpush3.bf16.msra.mxu0 %v465_v25 }
  0xf1   :  { %263 = vadd.xlane.f32.xlu1 %v262_v15 }
  0xf3   :  { %163 = vadd.xlane.f32.xlu0 %v162_v16 }
  0xf7   :  { %260 = vadd.xlane.f32.xlu0 %v259_v57 }
  0xfb   :  { %266 = vadd.xlane.f32.xlu0 %v265_v18 }
 0x174   :  { %v155_v27 = vpop.xlane.xlu0 %154 }
 0x175   :  { %v173_v29 = vadd.f32 %v169_v26, %v155_v27 }
 0x176   :  { %v158_v30 = vpop.xlane.xlu1 %157 }
 0x177   :  { %178 = vst.msk [vmem:[#allocation2] sm:$0xff] %vm177_vm5, %v173_v29  ;;  %v174_v31 = vadd.f32 %v170_v28, %v158_v30 }
 0x179   :  { %179 = vst.msk [vmem:[#allocation2 + $0x8] sm:$0xff] %vm177_vm5, %v174_v31 }
 0x17a   :  { %v258_v35 = vpop.xlane.xlu1 %257 }
 0x17c   :  { %v161_v33 = vpop.xlane.xlu0 %160 }
 0x17d   :  { %v175_v34 = vadd.f32 %v171_v32, %v161_v33 }
 0x17e   :  { %v272_v36 = vld [vmem:[#allocation2] sm:$0xff]  ;;  %v264_v44 = vpop.xlane.xlu1 %263 }
 0x17f   :  { %v276_v38 = vadd.f32 %v272_v36, %v258_v35  ;;  %180 = vst.msk [vmem:[#allocation2 + $0x10] sm:$0xff] %vm177_vm5, %v175_v34 }
 0x180   :  { %v164_v39 = vpop.xlane.xlu0 %163  ;;  %v273_v42 = vld [vmem:[#allocation2 + $0x8] sm:$0xff] }
 0x181   :  { %281 = vst.msk [vmem:[#allocation2] sm:$0xff] %vm280_vm6, %v276_v38  ;;  %v176_v40 = vadd.f32 %v172_v37, %v164_v39 }
 0x183   :  { %181 = vst.msk [vmem:[#allocation2 + $0x18] sm:$0xff] %vm177_vm5, %v176_v40 }
 0x184   :  { %v261_v41 = vpop.xlane.xlu0 %260 }
 0x185   :  { %v277_v43 = vadd.f32 %v273_v42, %v261_v41 }
 0x186   :  { %v274_v45 = vld [vmem:[#allocation2 + $0x10] sm:$0xff] }
 0x187   :  { %v278_v46 = vadd.f32 %v274_v45, %v264_v44  ;;  %282 = vst.msk [vmem:[#allocation2 + $0x8] sm:$0xff] %vm280_vm6, %v277_v43 }
 0x188   :  { %v288_v47 = vld [vmem:[#allocation2] sm:$0xff]  ;;  %v267_v48 = vpop.xlane.xlu0 %266 }
 0x189   :  { %283 = vst.msk [vmem:[#allocation2 + $0x10] sm:$0xff] %vm280_vm6, %v278_v46  ;;  %303 = vxpose.xlu1.b32.start [1/4] (short) (narrow) %v288_v47, 8 }
 0x18a   :  { %v275_v49 = vld [vmem:[#allocation2 + $0x18] sm:$0xff] }
 0x18b   :  { %v279_v50 = vadd.f32 %v275_v49, %v267_v48 }
 0x18d   :  { %284 = vst.msk [vmem:[#allocation2 + $0x18] sm:$0xff] %vm280_vm6, %v279_v50 }
 0x18e   :  { %v289_v51 = vld [vmem:[#allocation2 + $0x8] sm:$0xff] }
 0x18f   :  { %304 = vxpose.xlu1.b32.cont [2/4] (short) (narrow) %v289_v51, 8 }
 0x190   :  { %v290_v52 = vld [vmem:[#allocation2 + $0x10] sm:$0xff] }
 0x193   :  { %305 = vxpose.xlu1.b32.cont [3/4] (short) (narrow) %v290_v52, 8 }
 0x194   :  { %v291_v53 = vld [vmem:[#allocation2 + $0x18] sm:$0xff] }
 0x197   :  { %306 = vxpose.xlu1.b32.end [4/4] (short) (narrow) %v291_v53, 8 }
 0x20b   :  { %v319_v54 = vpop.trf.xlu1 }
 0x20c   :  { %459 = vmatmul.mubr.msk.f32.vlgmr.msra.gmra.mrb[8].mxu0 %vm335_vm7, %v319_v54 }
 0x2df   :  { %v405_v56 = vpop.f32.mrb[8].mxu0 }
 0x2e0   :  { %v406_v57 = vadd.f32 %v443_v55, %v405_v56  ;;  %v460_v58 = vpop.f32.mrb[9].mxu0 }
 0x2e2   :  { %v410_v59 = vsel %vm409_vm8, %v406_v57, -inf }
 0x2e3   :  { %411 = vmax.xlane.f32.xlu0 %v410_v59 }
 0x370   :  { %v412_v60 = vpop.xlane.xlu0 %411 }
 0x371   :  { %v413_v61 = vsub.f32 %v406_v57, %v412_v60 }
 0x373   :  { %v414_v62 = vmul.f32 1.442695, %v413_v61 }
 0x375   :  { %479 = vpow2.f32 %v414_v62 }
 0x37f   :  { %v480_v63 = vpop.eup %479 }
 0x380   :  { %v416_v0 = vsel %vm409_vm8, %v480_v63, 0.0 }
 0x381   :  { %417 = vadd.xlane.f32.xlu0 %v416_v0 }
 0x40e   :  { %v418_v1 = vpop.xlane.xlu0 %417 }
 0x40f   :  { %481 = vrcp.f32 %v418_v1 }
 0x419   :  { %v482_v2 = vpop.eup %481 }
 0x41a   :  { %v420_v3 = vmul.f32 %v482_v2, %v480_v63 }
 0x41c   :  { %421 = vst.msk [vmem:[#allocation3] sm:$0x3] %vm409_vm8, %v420_v3 }
 0x41d   :  { %494 = shalt.err (!%p491_p4)
}
 0x41e   :  { %s495_s19 = scalar_lea.hbm %s610_s5, 32 }
 0x41f   :  { %p496_p5 = scmp.ne.s32.totalorder %s610_s5, %s495_s19  ;;  %p499_p6 = scmp.lt.u32.totalorder %s495_s19, %s610_s5 }
 0x421   :  { %p501_p7 = pnand %p499_p6, %p496_p5 }
 0x423   :  { %504 = shalt.err (!%p501_p7)
}
 0x424   :  { %431 = dma.vmem_to_hbm [thread:$0]  %s429_s16, 32, %s610_s5, [#allocation4]  }
 0x425   :  { %505 = dma.done.wait [#allocation4], 32  }
 0x426   :  { %506 = vsyncadd [#allocation4], 4294967264 }
 0x427   :  { %435 = vsyncpa [#allocation4], 1 }

</bundles_post_ra>
